<compile_context>
chip_gen: v7x
topology: tpu7x:2x2x1
jax: 0.10.0
libtpu: 0.0.40
codegen_flags: <defaults>
</compile_context>

<pallas_src>
import jax
import jax.numpy as jnp
from jax.experimental import pallas as pl
from jax.experimental.pallas import tpu as pltpu


_LANES = 128


def _round_up(x, m):
    return ((x + m - 1) // m) * m


def _choose_tm(rows, tm_max=512):
    """Row-tile size: large enough to amortize per-grid-step overhead, but
    capped so small inputs still produce >= 2 grid steps (megacore)."""
    tm = min(tm_max, _round_up(max(rows // 2, 1), 8))
    return max(tm, 8)


def _pack_params(params):
    """Pack all (W, b) pairs into one (rows, 128)-lane f32 slab.

    Each layer section is 8-row aligned; rows [0, din) hold W (din, dout) and
    row din holds the bias, both left-justified in the 128 lanes.
    Returns (slab, meta) with meta = ((row_offset, din, dout), ...).
    """
    blocks, meta, off = [], [], 0
    for w, b in params:
        din, dout = w.shape
        sec = _round_up(din + 1, 8)
        blk = jnp.zeros((sec, _LANES), jnp.float32)
        blk = blk.at[:din, :dout].set(w.astype(jnp.float32))
        blk = blk.at[din, :dout].set(b.reshape(-1).astype(jnp.float32))
        blocks.append(blk)
        meta.append((off, din, dout))
        off += sec
    return jnp.concatenate(blocks, axis=0), tuple(meta)


def _make_kernel(meta, n_enc):
    n_layers = len(meta)

    def kernel(x_ref, p_ref, o_ref):
        # bf16 activations feed the MXU; accumulate in f32; bias/act in f32.
        h = x_ref[...]  # (tm, F) bf16
        for li, (off, din, dout) in enumerate(meta):
            # Static Ref slices -> no runtime cost; tiny per-layer bf16 cast
            # of the weight tile is amortized by the large row tile.
            w = p_ref[off:off + din, :dout].astype(jnp.bfloat16)
            b = p_ref[off + din:off + din + 1, :dout]          # (1, dout) f32
            acc = jnp.dot(h, w, preferred_element_type=jnp.float32) + b
            if li < n_enc:                # FeatureEncoder FFN: Linear -> Sigmoid
                h = jax.nn.sigmoid(acc).astype(jnp.bfloat16)
            elif li < n_layers - 1:       # envdec: Linear -> Tanh
                h = jnp.tanh(acc).astype(jnp.bfloat16)
            else:                         # final Linear, f32 store
                o_ref[...] = acc.astype(o_ref.dtype)

    return kernel


def mini_feature_model_forward(x, params, *, tm=None):
    """x: (B, N, F) float32.  params: list of (W[in,out], b[1,out]) pairs."""
    B, N, F = x.shape
    rows = B * N
    emb_dim = params[-1][0].shape[1]
    n_enc = len(params) - 3

    slab, meta = _pack_params(params)
    if tm is None:
        tm = _choose_tm(rows)
    rows_p = _round_up(rows, tm)

    x2 = x.reshape(rows, F).astype(jnp.bfloat16)
    if rows_p != rows:
        x2 = jnp.pad(x2, ((0, rows_p - rows), (0, 0)))

    out = pl.pallas_call(
        _make_kernel(meta, n_enc),
        out_shape=jax.ShapeDtypeStruct((rows_p, emb_dim), jnp.float32),
        grid=(rows_p // tm,),
        in_specs=[
            pl.BlockSpec((tm, F), lambda i: (i, 0)),
            # Single resident parameter slab; same block every step -> one DMA.
            pl.BlockSpec(slab.shape, lambda i: (0, 0)),
        ],
        out_specs=pl.BlockSpec((tm, emb_dim), lambda i: (i, 0)),
        compiler_params=pltpu.CompilerParams(
            dimension_semantics=("parallel",),
            vmem_limit_bytes=64 << 20,
        ),
    )(x2, slab)
    return out[:rows].reshape(B, N, emb_dim)


def _init_linear(key, fan_in, fan_out):
    """Deterministic PyTorch-Linear-like init; W stored as (in, out)."""
    kw, kb = jax.random.split(key)
    bound = 1.0 / jnp.sqrt(jnp.float32(fan_in))
    w = jax.random.uniform(kw, (fan_in, fan_out), jnp.float32, -bound, bound)
    b = jax.random.uniform(kb, (1, fan_out), jnp.float32, -bound, bound)
    return w, b


def build_params(key, *, env_dim, emb_hidden_dim, emb_dim, nn_length, nn_hidden_dim):
    params = []
    keys = jax.random.split(key, nn_length + 1 + 3)
    k = 0
    # encoder FFN: input -> hidden, (nn_length-1) x hidden->hidden, hidden -> emb_hidden_dim
    params.append(_init_linear(keys[k], env_dim, nn_hidden_dim)); k += 1
    for _ in range(nn_length - 1):
        params.append(_init_linear(keys[k], nn_hidden_dim, nn_hidden_dim)); k += 1
    params.append(_init_linear(keys[k], nn_hidden_dim, emb_hidden_dim)); k += 1
    # decoder: H -> H//2 -> H//4 -> emb_dim
    params.append(_init_linear(keys[k], emb_hidden_dim, emb_hidden_dim // 2)); k += 1
    params.append(_init_linear(keys[k], emb_hidden_dim // 2, emb_hidden_dim // 4)); k += 1
    params.append(_init_linear(keys[k], emb_hidden_dim // 4, emb_dim)); k += 1
    return params


if __name__ == "__main__":
    # Small shapes consistent with the forward pass.
    B, N, ENV_DIM = 2, 8, 11
    EMB_HIDDEN_DIM, EMB_DIM = 32, 16
    settings = {"nn_length": 2, "nn_hidden_dim": 32, "dropout_rate": 0.5}

    key = jax.random.PRNGKey(0)
    kx, kp = jax.random.split(key)
    x = jax.random.normal(kx, (B, N, ENV_DIM), jnp.float32)
    params = build_params(
        kp,
        env_dim=ENV_DIM,
        emb_hidden_dim=EMB_HIDDEN_DIM,
        emb_dim=EMB_DIM,
        nn_length=settings["nn_length"],
        nn_hidden_dim=settings["nn_hidden_dim"],
    )

    out = mini_feature_model_forward(x, params)
    out = jax.block_until_ready(out)
    assert out.shape == (B, N, EMB_DIM), out.shape

    n_enc = len(params) - 3
    n_layers = len(params)

    # Reference 1: mirrors the kernel's mixed precision (bf16 matmul inputs,
    # f32 accumulation / bias / activations) -> tight tolerance.
    h = x.reshape(B * N, ENV_DIM).astype(jnp.bfloat16)
    acc = None
    for i, (w, b) in enumerate(params):
        acc = jnp.dot(h, w.astype(jnp.bfloat16),
                      preferred_element_type=jnp.float32) + b
        if i < n_enc:
            h = jax.nn.sigmoid(acc).astype(jnp.bfloat16)
        elif i < n_layers - 1:
            h = jnp.tanh(acc).astype(jnp.bfloat16)
    ref_mixed = acc.reshape(B, N, EMB_DIM)
    assert jnp.allclose(out, ref_mixed, atol=1e-2, rtol=1e-2)

    # Reference 2: pure f32 math of the original module (loose tolerance covers
    # bf16 quantization of inputs / intermediate activations).
    h = x.reshape(B * N, ENV_DIM)
    for i, (w, b) in enumerate(params):
        h = h @ w + b
        if i < n_enc:
            h = jax.nn.sigmoid(h)
        elif i < n_layers - 1:
            h = jnp.tanh(h)
    ref_f32 = h.reshape(B, N, EMB_DIM)
    assert jnp.allclose(out, ref_f32, atol=5e-2, rtol=5e-2)

    print("KERNEL_OK")
</pallas_src>

<mosaic_0001>
module attributes {stable_mosaic.version = 11 : i64} {
  func.func @kernel(%arg0: i32, %arg1: memref<8x11xbf16, #tpu.memory_space<vmem>>, %arg2: memref<176x128xf32, #tpu.memory_space<vmem>>, %arg3: memref<8x16xf32, #tpu.memory_space<vmem>>) attributes {dimension_semantics = [#tpu.dimension_semantics<parallel>], iteration_bounds = array<i64: 2>, scalar_prefetch = 0 : i64, scratch_operands = 0 : i64, tpu.core_type = #tpu.core_type<tc>, window_params = [{transform_indices = @transform_0, window_bounds = array<i64: 8, 11>}, {pipeline_mode = #tpu.pipeline_mode<synchronous>, transform_indices = @transform_1, window_bounds = array<i64: 176, 128>}, {transform_indices = @transform_2, window_bounds = array<i64: 8, 16>}]} {
    %c0 = arith.constant 0 : index
    %c0_0 = arith.constant 0 : index
    %0 = vector.load %arg1[%c0, %c0_0] : memref<8x11xbf16, #tpu.memory_space<vmem>>, vector<8x11xbf16>
    %c0_1 = arith.constant 0 : index
    %c0_2 = arith.constant 0 : index
    %1 = vector.load %arg2[%c0_1, %c0_2] : memref<176x128xf32, #tpu.memory_space<vmem>>, vector<11x32xf32>
    %2 = arith.truncf %1 : vector<11x32xf32> to vector<11x32xbf16>
    %c11 = arith.constant 11 : index
    %c0_3 = arith.constant 0 : index
    %3 = vector.load %arg2[%c11, %c0_3] : memref<176x128xf32, #tpu.memory_space<vmem>>, vector<1x32xf32>
    %cst = arith.constant dense<0.000000e+00> : vector<8x32xf32>
    %4 = tpu.matmul %0, %2, %cst {dimension_numbers = #tpu.dot_dimension_numbers<[1], [0], [0], [1], [0, 0, 1, 1], [], []>} : vector<8x11xbf16>, vector<11x32xbf16>, vector<8x32xf32> -> vector<8x32xf32>
    %5 = vector.broadcast %3 : vector<1x32xf32> to vector<8x32xf32>
    %6 = arith.addf %4, %5 : vector<8x32xf32>
    %7 = arith.negf %6 : vector<8x32xf32>
    %8 = math.exp %7 : vector<8x32xf32>
    %cst_4 = arith.constant 1.000000e+00 : f32
    %9 = vector.broadcast %cst_4 : f32 to vector<8x32xf32>
    %10 = arith.addf %9, %8 : vector<8x32xf32>
    %11 = arith.divf %9, %10 : vector<8x32xf32>
    %12 = arith.truncf %11 : vector<8x32xf32> to vector<8x32xbf16>
    %c16 = arith.constant 16 : index
    %c0_5 = arith.constant 0 : index
    %13 = vector.load %arg2[%c16, %c0_5] : memref<176x128xf32, #tpu.memory_space<vmem>>, vector<32x32xf32>
    %14 = arith.truncf %13 : vector<32x32xf32> to vector<32x32xbf16>
    %c48 = arith.constant 48 : index
    %c0_6 = arith.constant 0 : index
    %15 = vector.load %arg2[%c48, %c0_6] : memref<176x128xf32, #tpu.memory_space<vmem>>, vector<1x32xf32>
    %cst_7 = arith.constant dense<0.000000e+00> : vector<8x32xf32>
    %16 = tpu.matmul %12, %14, %cst_7 {dimension_numbers = #tpu.dot_dimension_numbers<[1], [0], [0], [1], [0, 0, 1, 1], [], []>} : vector<8x32xbf16>, vector<32x32xbf16>, vector<8x32xf32> -> vector<8x32xf32>
    %17 = vector.broadcast %15 : vector<1x32xf32> to vector<8x32xf32>
    %18 = arith.addf %16, %17 : vector<8x32xf32>
    %19 = arith.negf %18 : vector<8x32xf32>
    %20 = math.exp %19 : vector<8x32xf32>
    %cst_8 = arith.constant 1.000000e+00 : f32
    %21 = vector.broadcast %cst_8 : f32 to vector<8x32xf32>
    %22 = arith.addf %21, %20 : vector<8x32xf32>
    %23 = arith.divf %21, %22 : vector<8x32xf32>
    %24 = arith.truncf %23 : vector<8x32xf32> to vector<8x32xbf16>
    %c56 = arith.constant 56 : index
    %c0_9 = arith.constant 0 : index
    %25 = vector.load %arg2[%c56, %c0_9] : memref<176x128xf32, #tpu.memory_space<vmem>>, vector<32x32xf32>
    %26 = arith.truncf %25 : vector<32x32xf32> to vector<32x32xbf16>
    %c88 = arith.constant 88 : index
    %c0_10 = arith.constant 0 : index
    %27 = vector.load %arg2[%c88, %c0_10] : memref<176x128xf32, #tpu.memory_space<vmem>>, vector<1x32xf32>
    %cst_11 = arith.constant dense<0.000000e+00> : vector<8x32xf32>
    %28 = tpu.matmul %24, %26, %cst_11 {dimension_numbers = #tpu.dot_dimension_numbers<[1], [0], [0], [1], [0, 0, 1, 1], [], []>} : vector<8x32xbf16>, vector<32x32xbf16>, vector<8x32xf32> -> vector<8x32xf32>
    %29 = vector.broadcast %27 : vector<1x32xf32> to vector<8x32xf32>
    %30 = arith.addf %28, %29 : vector<8x32xf32>
    %31 = arith.negf %30 : vector<8x32xf32>
    %32 = math.exp %31 : vector<8x32xf32>
    %cst_12 = arith.constant 1.000000e+00 : f32
    %33 = vector.broadcast %cst_12 : f32 to vector<8x32xf32>
    %34 = arith.addf %33, %32 : vector<8x32xf32>
    %35 = arith.divf %33, %34 : vector<8x32xf32>
    %36 = arith.truncf %35 : vector<8x32xf32> to vector<8x32xbf16>
    %c96 = arith.constant 96 : index
    %c0_13 = arith.constant 0 : index
    %37 = vector.load %arg2[%c96, %c0_13] : memref<176x128xf32, #tpu.memory_space<vmem>>, vector<32x16xf32>
    %38 = arith.truncf %37 : vector<32x16xf32> to vector<32x16xbf16>
    %c128 = arith.constant 128 : index
    %c0_14 = arith.constant 0 : index
    %39 = vector.load %arg2[%c128, %c0_14] : memref<176x128xf32, #tpu.memory_space<vmem>>, vector<1x16xf32>
    %cst_15 = arith.constant dense<0.000000e+00> : vector<8x16xf32>
    %40 = tpu.matmul %36, %38, %cst_15 {dimension_numbers = #tpu.dot_dimension_numbers<[1], [0], [0], [1], [0, 0, 1, 1], [], []>} : vector<8x32xbf16>, vector<32x16xbf16>, vector<8x16xf32> -> vector<8x16xf32>
    %41 = vector.broadcast %39 : vector<1x16xf32> to vector<8x16xf32>
    %42 = arith.addf %40, %41 : vector<8x16xf32>
    %43 = math.tanh %42 : vector<8x16xf32>
    %44 = arith.truncf %43 : vector<8x16xf32> to vector<8x16xbf16>
    %c136 = arith.constant 136 : index
    %c0_16 = arith.constant 0 : index
    %45 = vector.load %arg2[%c136, %c0_16] : memref<176x128xf32, #tpu.memory_space<vmem>>, vector<16x8xf32>
    %46 = arith.truncf %45 : vector<16x8xf32> to vector<16x8xbf16>
    %c152 = arith.constant 152 : index
    %c0_17 = arith.constant 0 : index
    %47 = vector.load %arg2[%c152, %c0_17] : memref<176x128xf32, #tpu.memory_space<vmem>>, vector<1x8xf32>
    %cst_18 = arith.constant dense<0.000000e+00> : vector<8x8xf32>
    %48 = tpu.matmul %44, %46, %cst_18 {dimension_numbers = #tpu.dot_dimension_numbers<[1], [0], [0], [1], [0, 0, 1, 1], [], []>} : vector<8x16xbf16>, vector<16x8xbf16>, vector<8x8xf32> -> vector<8x8xf32>
    %49 = vector.broadcast %47 : vector<1x8xf32> to vector<8x8xf32>
    %50 = arith.addf %48, %49 : vector<8x8xf32>
    %51 = math.tanh %50 : vector<8x8xf32>
    %52 = arith.truncf %51 : vector<8x8xf32> to vector<8x8xbf16>
    %c160 = arith.constant 160 : index
    %c0_19 = arith.constant 0 : index
    %53 = vector.load %arg2[%c160, %c0_19] : memref<176x128xf32, #tpu.memory_space<vmem>>, vector<8x16xf32>
    %54 = arith.truncf %53 : vector<8x16xf32> to vector<8x16xbf16>
    %c168 = arith.constant 168 : index
    %c0_20 = arith.constant 0 : index
    %55 = vector.load %arg2[%c168, %c0_20] : memref<176x128xf32, #tpu.memory_space<vmem>>, vector<1x16xf32>
    %cst_21 = arith.constant dense<0.000000e+00> : vector<8x16xf32>
    %56 = tpu.matmul %52, %54, %cst_21 {dimension_numbers = #tpu.dot_dimension_numbers<[1], [0], [0], [1], [0, 0, 1, 1], [], []>} : vector<8x8xbf16>, vector<8x16xbf16>, vector<8x16xf32> -> vector<8x16xf32>
    %57 = vector.broadcast %55 : vector<1x16xf32> to vector<8x16xf32>
    %58 = arith.addf %56, %57 : vector<8x16xf32>
    %c0_22 = arith.constant 0 : index
    %c0_23 = arith.constant 0 : index
    %59 = vector.load %arg3[%c0_22, %c0_23] : memref<8x16xf32, #tpu.memory_space<vmem>>, vector<8x16xf32>
    tpu.vector_store %arg3[%c0_22, %c0_23], %58 {strides = array<i32>} : memref<8x16xf32, #tpu.memory_space<vmem>>, vector<8x16xf32>,
    return
  }
  func.func @transform_0(%arg0: i32) -> (i32, i32) {
    %c0_i32 = arith.constant 0 : i32
    %c0_i32_0 = arith.constant 0 : i32
    return %arg0, %c0_i32 : i32, i32
  }
  func.func @transform_1(%arg0: i32) -> (i32, i32) {
    %c0_i32 = arith.constant 0 : i32
    %c0_i32_0 = arith.constant 0 : i32
    %c0_i32_1 = arith.constant 0 : i32
    return %c0_i32, %c0_i32_0 : i32, i32
  }
  func.func @transform_2(%arg0: i32) -> (i32, i32) {
    %c0_i32 = arith.constant 0 : i32
    %c0_i32_0 = arith.constant 0 : i32
    return %arg0, %c0_i32 : i32, i32
  }
}

</mosaic_0001>

<bundles_post_ra>
// kernel: tpu_custom_call.1
= control target key start
LH: loop header
LB: loop body
LE: loop exit
PB: predicated region body
PF: predicated region fallthrough
CT: control target
= control target key end

     0   :  { %7 = vsyncpa [#allocation3], 0  ;;  %s1165_s0 = inlined_call_operand.hbm [shape: bf16[16,11], index: 0, kind: input, shape index: {}]   ;;  %s1166_s1 = inlined_call_operand.hbm [shape: f32[176,128], index: 1, kind: input, shape index: {}]   ;;  %s1167_s2 = inlined_call_operand.hbm [shape: f32[16,16], index: 2, kind: output, shape index: {}]  }
   0x1   :  { %9 = vsyncpa [#allocation3 + $0x1], 0 }
   0x2   :  { %10 = vsyncpa [#allocation6], 0 }
   0x3   :  { %11 = vsyncpa [#allocation4], 0 }
   0x4   :  { %13 = vsyncpa [#allocation4 + $0x1], 0  ;;  %s942_s9 = smov 0   ;;  %s944_s10 = smov 0  }
   0x5   :  { %s946_s11 = smov 0   ;;  %s948_s12 = smov 0  }
   0x6 LB: > { %s963_s13 = sadd.s32 4294967295, %s917_s12   ;;  %s625_s14 = sadd.s32 4294967294, %s917_s12   ;;  %s917_s12 = sphi %s948_s12, %s1187_s12   ;;  %s913_s11 = sphi %s946_s11, %s1186_s11   ;;  %s909_s10 = sphi %s944_s10, %s1185_s10   ;;  %s905_s9 = sphi %s942_s9, %s1184_s9  }
   0x7   : > { %p39_p0 = scmp.ne.s32.totalorder %s909_s10, %s905_s9  ;;  %p1168_p1 = scmp.eq.s32.totalorder %s963_s13, 0 }
   0x8   : > { %p90_p3 = scmp.eq.s32.totalorder %s625_s14, 1  ;;  %p626_p5 = scmp.ge.s32.totalorder %s917_s12, 1 }
   0x9   : > { %p972_p4 = por %p1168_p1, %p39_p0  ;;  %p97_p7 = scmp.lt.s32.totalorder %s917_s12, 3 }
   0xa   : > { %p977_p6 = por %p90_p3, %p39_p0  ;;  %s919_s18 = smov [#allocation5]  }
   0xb   : > { %s1171_s15 = scalar_select %p972_p4, 1, 0 }
   0xc   : > { %s1172_s16 = scalar_select %p977_p6, 1, 0 }
   0xd   : > { %p982_p8 = pnand %p626_p5, %p97_p7  ;;  %s109_s19 = sshll.u32 %s919_s18, 4  ;;  %s986_s19 = int_to_ptr.vmem [resolvable:$true] %s109_s19 }
   0xe   : > { %s998_s21 = sadd.s32 1, %s917_s12   ;;  %s26_s22 = sadd.s32 1, %s913_s11 }
   0xf   : > { %s1173_s17 = scalar_select %p982_p8, 1, 0 }
  0x10   : > { %p719_p9 = pneg %p982_p8  ;;  %s23_s23 = ssub.s32 %s917_s12, %s998_s21 }
  0x11   : > { %s789_s26 = scalar_lea.hbm %s1166_s1, 2816 }
  0x12   : > { %p993_p11 = pnand %p719_p9, %p1168_p1  ;;  %p790_p12 = scmp.ne.s32.totalorder %s1166_s1, %s789_s26 }
  0x13   : > { %p796_p5 = scmp.lt.u32.totalorder %s789_s26, %s1166_s1 }
  0x14   : > { %p791_p13 = pneg %p993_p11 }
  0x16   : > { %p792_p0 = pnand %p791_p13, %p790_p12 }
  0x18   : > { %p793_p3 = pneg %p792_p0 }
  0x1a   : > { %p798_p7 = pnand %p796_p5, %p793_p3 }
  0x1c   : > { %801 = shalt.err (!%p798_p7)
}
  0x1d   : > { %s802_s3 = scalar_lea.vmem %s986_s19, 2816  ;;  %p810_p2 = scmp.lt.s32.totalorder %s986_s19, %s986_s19 }
  0x1e   : > { %p803_p9 = scmp.ne.s32.totalorder %s986_s19, %s802_s3  ;;  %p811_p6 = scmp.lt.s32.totalorder %s802_s3, %s802_s3 }
  0x20   : > { %p805_p10 = pnand %p803_p9, %p791_p13  ;;  %p812_p4 = por %p811_p6, %p810_p2 }
  0x22   : > { %p806_p1 = pneg %p805_p10 }
  0x24   : > { %p813_p8 = pnand %p812_p4, %p806_p1 }
  0x26   : > { %816 = shalt.err (!%p813_p8)
}
  0x27   : > { %s920_s4 = smov 128   ;;  %s921_s5 = smov 8  }
  0x28   : > { %722 = dma.hbm_to_vmem [thread:$0]  (!%p993_p11), %s1166_s1, 2816, %s986_s19, [#allocation6], %s920_s4, %s920_s4, %s921_s5  }
  0x29   : > { %p24_p2 = scmp.eq.s32.totalorder %s23_s23, 0  ;;  %p33_p1 = scmp.ne.s32.totalorder %s913_s11, %s909_s10 }
  0x2a   : > { %p34_p4 = scmp.eq.s32.totalorder %s917_s12, 0  ;;  %p732_p6 = scmp.lt.s32.totalorder %s917_s12, 2 }
  0x2b   : > { %s1029_s8 = scalar_select %p24_p2, %s913_s11, %s26_s22  }
  0x2c   : > { %p35_p8 = por %p34_p4, %p33_p1  ;;  %p1175_p10 = scmp.eq.s32.totalorder %s963_s13, 1 }
  0x2d   : > { %s123_s18 = sand.u32 1, %s913_s11   ;;  %s630_s24 = sshll.u32 %s917_s12, 6 }
  0x2e   : > { %p1033_p12 = por %p1175_p10, %p33_p1  ;;  %s629_s25 = sshll.u32 %s123_s18, 2 }
  0x2f   : > { %s1042_s27 = scalar_lea.hbm %s1165_s0, %s630_s24  ;;  %s127_s19 = scalar_lea.vmem [#allocation2], %s629_s25 }
  0x30   : > { %s134_s22 = sshll.u32 %s127_s19, 4  ;;  %p1044_p11 = pnand %p732_p6, %p35_p8  ;;  %s1048_s22 = int_to_ptr.vmem [resolvable:$true] %s134_s22 }
  0x31   : > { %s124_s28 = scalar_lea.sflag [#allocation3], %s123_s18  ;;  %s817_s29 = scalar_lea.hbm %s1042_s27, 64 }
  0x32   : > { %p818_p13 = scmp.ne.s32.totalorder %s1042_s27, %s817_s29  ;;  %p819_p0 = pneg %p1044_p11 }
  0x33   : > { %s822_s4 = scalar_lea.hbm %s1165_s0, 128  ;;  %p823_p7 = scmp.lt.u32.totalorder %s1042_s27, %s1165_s0 }
  0x34   : > { %p820_p3 = pnand %p819_p0, %p818_p13  ;;  %p824_p9 = scmp.lt.u32.totalorder %s822_s4, %s817_s29 }
  0x35   : > { %p826_p1 = scmp.lt.u32.totalorder %s817_s29, %s1042_s27 }
  0x36   : > { %p821_p5 = pneg %p820_p3  ;;  %p825_p2 = por %p824_p9, %p823_p7 }
  0x38   : > { %p827_p4 = por %p826_p1, %p825_p2 }
  0x3a   : > { %p828_p6 = pnand %p827_p4, %p821_p5 }
  0x3c   : > { %831 = shalt.err (!%p828_p6)
}
  0x3d   : > { %s832_s7 = scalar_lea.vmem %s1048_s22, 64  ;;  %s922_s18 = smov [#allocation2]  }
  0x3e   : > { %p833_p8 = scmp.ne.s32.totalorder %s1048_s22, %s832_s7  ;;  %s837_s24 = sshll.u32 %s922_s18, 4  ;;  %s838_s24 = int_to_ptr.vmem [resolvable:$false] %s837_s24 }
  0x3f   : > { %s839_s25 = scalar_lea.vmem %s838_s24, 128  ;;  %p840_p3 = scmp.lt.s32.totalorder %s1048_s22, %s838_s24 }
  0x40   : > { %p835_p10 = pnand %p833_p8, %p819_p0  ;;  %p841_p7 = scmp.lt.s32.totalorder %s839_s25, %s832_s7 }
  0x42   : > { %p836_p13 = pneg %p835_p10  ;;  %p842_p9 = por %p841_p7, %p840_p3 }
  0x44   : > { %p843_p2 = pnand %p842_p9, %p836_p13 }
  0x46   : > { %846 = shalt.err (!%p843_p2)
}
  0x47   : > { %726 = dma.hbm_to_vmem [thread:$0]  (!%p1044_p11), %s1042_s27, 64, %s1048_s22, %s124_s28  }
  0x48   : > { %p1178_p5 = scmp.ne.s32.totalorder %s1173_s17, 0 }
  0x49   : > { %s1078_s20 = sand.u32 (!%p1178_p5), 1, %s909_s10   ;;  %p1179_p0 = scmp.ne.s32.totalorder (!%p1178_p5), %s1171_s15, 0 }
  0x4a   : > { %143 = sbr.rel (%p1178_p5) target bundleno = 1502 (0x5de), region = 28  ;;  %s632_s26 = sshll.u32 (!%p1178_p5), %s1078_s20, 2 }
  0x4b   : > { %s146_s19 = scalar_lea.sflag (!%p1178_p5), [#allocation3], %s1078_s20  ;;  %s149_s29 = scalar_lea.vmem (!%p1178_p5), [#allocation2], %s632_s26 }
  0x51   : > { %892 = dma.done.wait (%p1179_p0), %s146_s19, 64  }
  0x52   : > { %894 = vsyncadd (%p1179_p0), %s146_s19, 4294967232  ;;  %p1180_p1 = scmp.eq.s32.totalorder %s963_s13, 0 }
  0x54   : > { %896 = dma.done.wait (%p1180_p1), [#allocation6], 2816   ;;  %p1181_p11 = pmov %p1180_p1 }
  0x55   : > { %v923_v0 = vmov 0.0   ;;  %vm188_vm0 = vcmask 1044480   ;;  %vm924_vm1 = vmmov 0   ;;  %vm189_vm2 = vcmask 1045504   ;;  %v176_v3 = vld [vmem:[#allocation5] sm:$0xff]  ;;  %v242_v9 = vld [vmem:[#allocation5 + $0x10] sm:$0xff] }
  0x56   : > { %898 = vsyncadd (%p1181_p11), [#allocation6], 4294964480  ;;  %669 = vmatprep.subr.bf16.mxu0 %v923_v0  ;;  %675 = vmatprep.subr.bf16.mxu1 %v923_v0  ;;  %v925_v1 = vmov 65535   ;;  %v177_v4 = vld [vmem:[#allocation5 + $0x8] sm:$0x7]  ;;  %vm184_vm3 = vcmask 89088  }
  0x57   : > { %671 = vmatprep.mubr.msk.bf16.mxu0 %vm924_vm1, %v923_v0  ;;  %679 = vmatprep.mubr.msk.bf16.mxu1 %vm924_vm1, %v923_v0  ;;  %v190_v2 = vsel %vm188_vm0, 4294967295, %v925_v1  ;;  %v178_v6 = vpack.c.bf16 %v177_v4, %v176_v3  ;;  %v175_v8 = vld [vmem:[%s149_s29] sm:$0xf]  ;;  %v244_v11 = vld [vmem:[#allocation5 + $0x20] sm:$0xff]  ;;  %v245_v13 = vld [vmem:[#allocation5 + $0x28] sm:$0xff]  ;;  %vm253_vm4 = vcmask 261120  }
  0x58   : > { %v191_v5 = vsel %vm189_vm2, %v190_v2, 0  ;;  %v243_v10 = vld [vmem:[#allocation5 + $0x18] sm:$0xff]  ;;  %v247_v14 = vpack.c.bf16 %v245_v13, %v244_v11  ;;  %v635_v15 = vld [vmem:[#allocation5 + $0xb] ss:$0 sm:$0xff]  ;;  %v305_v27 = vld [vmem:[#allocation5 + $0x40] sm:$0xff]  ;;  %vm429_vm5 = vcmask 130048  }
  0x59   : > { %v193_v7 = vand.u32 %v191_v5, %v178_v6  ;;  %v246_v12 = vpack.c.bf16 %v243_v10, %v242_v9  ;;  %v304_v26 = vld [vmem:[#allocation5 + $0x38] sm:$0xff]  ;;  %v306_v29 = vld [vmem:[#allocation5 + $0x48] sm:$0xff]  ;;  %v307_v30 = vld [vmem:[#allocation5 + $0x50] sm:$0xff]  ;;  %vm486_vm6 = vcmask 1043456   ;;  %vm482_vm7 = vcmask 64512   ;;  %s634_s15 = sshll.u32 %s1078_s20, 3 }
  0x5a   : > { %v308_v28 = vpack.c.bf16 %v305_v27, %v304_v26  ;;  %v309_v31 = vpack.c.bf16 %v307_v30, %v306_v29  ;;  %v638_v32 = vld [vmem:[#allocation5 + $0x30] ss:$0 sm:$0xff]  ;;  %v365_v43 = vld [vmem:[#allocation5 + $0x60] sm:$0xff]  ;;  %v366_v44 = vld [vmem:[#allocation5 + $0x68] sm:$0xff]  ;;  %s651_s17 = sshll.u32 %s963_s13, 7  ;;  %s173_s27 = scalar_lea.vmem [#allocation7], %s634_s15 }
  0x5b   : > { %670 = vmatpush3.bf16.msra.mxu0 %v193_v7  ;;  %676 = vmatpush3.bf16.msra.mxu1 %v246_v12  ;;  %v369_v45 = vpack.c.bf16 %v366_v44, %v365_v43  ;;  %v367_v46 = vld [vmem:[#allocation5 + $0x70] sm:$0xff]  ;;  %v368_v47 = vld [vmem:[#allocation5 + $0x78] sm:$0xff]  ;;  %v421_v60 = vld [vmem:[#allocation5 + $0x88] sm:$0xff]  ;;  %s545_s22 = sshll.u32 %s173_s27, 4  ;;  %s1120_s30 = scalar_lea.hbm %s1167_s2, %s651_s17  ;;  %s1122_s22 = int_to_ptr.vmem [resolvable:$true] %s545_s22 }
  0x5c   : > { %683 = vmatprep.subr.bf16.mxu0 %v923_v0  ;;  %677 = vmatprep.subr.bf16.mxu1 %v923_v0  ;;  %v370_v48 = vpack.c.bf16 %v368_v47, %v367_v46  ;;  %v641_v49 = vld [vmem:[#allocation5 + $0x58] ss:$0 sm:$0xff]  ;;  %v422_v61 = vld [vmem:[#allocation5 + $0x90] sm:$0xff]  ;;  %v644_v63 = vld [vmem:[#allocation5 + $0x80] ss:$0 sm:$0xff]  ;;  %s532_s13 = scalar_lea.sflag [#allocation4], %s1078_s20 }
  0x5d   : > { %v423_v62 = vpack.c.bf16 %v422_v61, %v421_v60  ;;  %v646_v10 = vld [vmem:[#allocation5 + $0x98] ss:$0 sm:$0xff]  ;;  %s847_s3 = scalar_lea.vmem %s1122_s22, 128  ;;  %s926_s4 = smov [#allocation7]  }
  0x5e   : > { %672 = vmatmul.mubr.msk.bf16.vlgmr.msra.gmra.mrb[0].mxu0 %vm184_vm3, %v175_v8  ;;  %v475_v8 = vld [vmem:[#allocation5 + $0xa0] sm:$0xff]  ;;  %p848_p4 = scmp.ne.s32.totalorder %s1122_s22, %s847_s3  ;;  %s851_s5 = sshll.u32 %s926_s4, 4  ;;  %s852_s5 = int_to_ptr.vmem [resolvable:$false] %s851_s5 }
  0x5f   : > { %687 = vmatprep.mubr.msk.bf16.mxu0 %vm924_vm1, %v923_v0  ;;  %678 = vmatpush3.bf16.msra.mxu1 %v247_v14  ;;  %v476_v9 = vpack.c.bf16 %v475_v8, %v475_v8  ;;  %s853_s6 = scalar_lea.vmem %s852_s5, 256  ;;  %p854_p10 = scmp.lt.s32.totalorder %s1122_s22, %s852_s5 }
  0x60   : > { %691 = vmatprep.subr.bf16.mxu1 %v923_v0  ;;  %684 = vmatpush3.bf16.msra.mxu0 %v308_v28  ;;  %p849_p6 = pnand %p848_p4, %p1033_p12  ;;  %p855_p13 = scmp.lt.s32.totalorder %s853_s6, %s847_s3 }
  0x61   : > { %685 = vmatprep.subr.bf16.mxu0 %v923_v0 }
  0x62   : > { %p850_p8 = pneg %p849_p6  ;;  %p856_p3 = por %p855_p13, %p854_p10 }
  0x64   : > { %686 = vmatpush3.bf16.msra.mxu0 %v309_v31  ;;  %p857_p7 = pnand %p856_p3, %p850_p8 }
  0x65   : > { %699 = vmatprep.subr.bf16.mxu0 %v923_v0 }
 0x131   : > { %v229_v16 = vpop.f32.mrb[0].mxu0 }
 0x132   : > { %v230_v17 = vadd.f32 %v635_v15, %v229_v16  ;;  %v673_v18 = vpop.f32.mrb[1].mxu0 }
 0x133   : > { %v232_v19 = vpop.f32.mrb[2].mxu0  ;;  %v648_v18 = vld [vmem:[#allocation5 + $0xa8] ss:$0 sm:$0xff] }
 0x134   : > { %v637_v20 = vmul.f32 -1.442695, %v230_v17  ;;  %v674_v21 = vpop.f32.mrb[3].mxu0 }
 0x136   : > { %773 = vpow2.f32 %v637_v20 }
 0x140   : > { %v774_v22 = vpop.eup %773 }
 0x141   : > { %v238_v23 = vadd.f32 1.0, %v774_v22 }
 0x143   : > { %775 = vrcp.f32 %v238_v23 }
 0x14d   : > { %v776_v24 = vpop.eup %775 }
 0x14e   : > { %v241_v25 = vpack.c.bf16 %v776_v24, %v776_v24 }
 0x150   : > { %680 = vmatmul.mubr.msk.bf16.vlgmr.msra.gmra.mrb[0].mxu1 %vm253_vm4, %v241_v25 }
 0x151   : > { %695 = vmatprep.mubr.msk.bf16.mxu1 %vm924_vm1, %v923_v0  ;;  %692 = vmatpush3.bf16.msra.mxu1 %v369_v45 }
 0x152   : > { %693 = vmatprep.subr.bf16.mxu1 %v923_v0 }
 0x155   : > { %694 = vmatpush3.bf16.msra.mxu1 %v370_v48 }
 0x156   : > { %705 = vmatprep.subr.bf16.mxu1 %v923_v0 }
 0x223   : > { %v291_v33 = vpop.f32.mrb[0].mxu1 }
 0x224   : > { %v292_v34 = vadd.f32 %v638_v32, %v291_v33  ;;  %v681_v35 = vpop.f32.mrb[1].mxu1 }
 0x225   : > { %v294_v36 = vpop.f32.mrb[2].mxu1 }
 0x226   : > { %v640_v37 = vmul.f32 -1.442695, %v292_v34  ;;  %v682_v38 = vpop.f32.mrb[3].mxu1 }
 0x228   : > { %777 = vpow2.f32 %v640_v37 }
 0x232   : > { %v778_v39 = vpop.eup %777 }
 0x233   : > { %v300_v40 = vadd.f32 1.0, %v778_v39 }
 0x235   : > { %779 = vrcp.f32 %v300_v40 }
 0x23f   : > { %v780_v41 = vpop.eup %779 }
 0x240   : > { %v303_v42 = vpack.c.bf16 %v780_v41, %v780_v41 }
 0x242   : > { %688 = vmatmul.mubr.msk.bf16.vlgmr.msra.gmra.mrb[4].mxu0 %vm253_vm4, %v303_v42 }
 0x243   : > { %701 = vmatprep.mubr.msk.bf16.mxu0 %vm924_vm1, %v923_v0  ;;  %700 = vmatpush3.bf16.msra.mxu0 %v423_v62 }
 0x315   : > { %v352_v50 = vpop.f32.mrb[4].mxu0 }
 0x316   : > { %v353_v51 = vadd.f32 %v641_v49, %v352_v50  ;;  %v689_v52 = vpop.f32.mrb[5].mxu0 }
 0x317   : > { %v355_v53 = vpop.f32.mrb[6].mxu0 }
 0x318   : > { %v643_v54 = vmul.f32 -1.442695, %v353_v51  ;;  %v690_v55 = vpop.f32.mrb[7].mxu0 }
 0x31a   : > { %781 = vpow2.f32 %v643_v54 }
 0x324   : > { %v782_v56 = vpop.eup %781 }
 0x325   : > { %v361_v57 = vadd.f32 1.0, %v782_v56 }
 0x327   : > { %783 = vrcp.f32 %v361_v57 }
 0x331   : > { %v784_v58 = vpop.eup %783 }
 0x332   : > { %v364_v59 = vpack.c.bf16 %v784_v58, %v784_v58 }
 0x334   : > { %696 = vmatmul.mubr.msk.bf16.vlgmr.msra.gmra.mrb[4].mxu1 %vm253_vm4, %v364_v59 }
 0x335   : > { %707 = vmatprep.mubr.msk.bf16.mxu1 %vm924_vm1, %v923_v0  ;;  %v488_v0 = vsel %vm486_vm6, %v476_v9, 0 }
 0x336   : > { %706 = vmatpush3.bf16.msra.mxu1 %v488_v0 }
 0x407   : > { %v413_v1 = vpop.f32.mrb[4].mxu1 }
 0x408   : > { %v414_v2 = vadd.f32 %v644_v63, %v413_v1  ;;  %v697_v3 = vpop.f32.mrb[5].mxu1 }
 0x409   : > { %v416_v4 = vpop.f32.mrb[6].mxu1 }
 0x40a   : > { %785 = vtanh.f32 %v414_v2  ;;  %v698_v5 = vpop.f32.mrb[7].mxu1 }
 0x414   : > { %v786_v6 = vpop.eup %785 }
 0x415   : > { %v420_v7 = vpack.c.bf16 %v786_v6, %v786_v6 }
 0x417   : > { %702 = vmatmul.mubr.msk.bf16.vlgmr.msra.gmra.mrb[8].mxu0 %vm429_vm5, %v420_v7 }
 0x4ea   : > { %v467_v11 = vpop.f32.mrb[8].mxu0 }
 0x4eb   : > { %v468_v12 = vadd.f32 %v646_v10, %v467_v11  ;;  %v703_v13 = vpop.f32.mrb[9].mxu0 }
 0x4ec   : > { %v470_v14 = vpop.f32.mrb[10].mxu0 }
 0x4ed   : > { %787 = vtanh.f32 %v468_v12  ;;  %v704_v15 = vpop.f32.mrb[11].mxu0 }
 0x4f7   : > { %v788_v16 = vpop.eup %787 }
 0x4f8   : > { %v474_v17 = vpack.c.bf16 %v788_v16, %v788_v16 }
 0x4fa   : > { %708 = vmatmul.mubr.msk.bf16.vlgmr.msra.gmra.mrb[8].mxu1 %vm482_vm7, %v474_v17 }
 0x5cd   : > { %v524_v19 = vpop.f32.mrb[8].mxu1 }
 0x5ce   : > { %v525_v20 = vadd.f32 %v648_v18, %v524_v19  ;;  %v709_v21 = vpop.f32.mrb[9].mxu1 }
 0x5cf   : > { %v527_v22 = vpop.f32.mrb[10].mxu1 }
 0x5d0   : > { %v710_v23 = vpop.f32.mrb[11].mxu1  ;;  %530 = vst.msk [vmem:[%s173_s27] sm:$0xff] %vm429_vm5, %v525_v20 }
 0x5d1   : > { %860 = shalt.err (!%p857_p7)
}
 0x5d2   : > { %s861_s7 = scalar_lea.hbm %s1120_s30, 128  ;;  %s865_s25 = scalar_lea.hbm %s1167_s2, 256 }
 0x5d3   : > { %p862_p9 = scmp.ne.s32.totalorder %s1120_s30, %s861_s7  ;;  %p866_p0 = scmp.lt.u32.totalorder %s1120_s30, %s1167_s2 }
 0x5d4   : > { %p867_p1 = scmp.lt.u32.totalorder %s865_s25, %s861_s7  ;;  %p869_p4 = scmp.lt.u32.totalorder %s861_s7, %s1120_s30 }
 0x5d5   : > { %p863_p2 = pnand %p862_p9, %p1033_p12 }
 0x5d6   : > { %p868_p11 = por %p867_p1, %p866_p0 }
 0x5d7   : > { %p864_p5 = pneg %p863_p2 }
 0x5d8   : > { %p870_p6 = por %p869_p4, %p868_p11 }
 0x5da   : > { %p871_p8 = pnand %p870_p6, %p864_p5 }
 0x5dc   : > { %874 = shalt.err (!%p871_p8)
}
 0x5dd   : > { %717 = dma.vmem_to_hbm [thread:$0]  (%p1033_p12), %s1122_s22, 128, %s1120_s30, %s532_s13  }
 0x5de PF: > { %s557_s19 = sand.u32 1, %s905_s9   ;;  %p1182_p10 = scmp.ne.s32.totalorder %s1172_s16, 0 }
 0x5df   : > { %p1183_p13 = scmp.ge.s32.totalorder %s917_s12, 2  ;;  %s558_s29 = scalar_lea.sflag [#allocation4], %s557_s19 }
 0x5e1   : > { %p728_p3 = pnand %p1183_p13, %p1182_p10 }
 0x5e3   : > { %900 = dma.done.wait (!%p728_p3), %s558_s29, 128  }
 0x5e4   : > { %902 = vsyncadd (!%p728_p3), %s558_s29, 4294967168  ;;  %p16_p7 = scmp.ge.s32.totalorder %s998_s21, 4   ;;  %s1184_s9 = smov %s909_s10 }
 0x5e5   : > { %s1185_s10 = smov %s913_s11  ;;  %s1186_s11 = smov %s1029_s8 }
 0x5e6   : > { %s1187_s12 = smov %s998_s21  ;;  %18 = sbr.rel (!%p16_p7) target bundleno = 6 (0x6), region = 77 }
 0x5ed   :  { %563 = vsyncpa [#allocation3], 1 }
 0x5ee   :  { %565 = vsyncpa [#allocation3 + $0x1], 1 }
 0x5ef   :  { %566 = vsyncpa [#allocation6], 1 }
 0x5f0   :  { %567 = vsyncpa [#allocation4], 1 }
 0x5f1   :  { %569 = vsyncpa [#allocation4 + $0x1], 1 }

</bundles_post_ra>
